<compile_context>
chip_gen: v7x
topology: tpu7x:2x2x1
jax: 0.10.0
libtpu: 0.0.40
codegen_flags: <defaults>
</compile_context>

<pallas_src>
import jax
import jax.numpy as jnp
from jax.experimental import pallas as pl
from jax.experimental.pallas import tpu as pltpu


def tv_loss_ref(x, tv_loss_weight: float = 1.0):
    """Pure-JAX reference (also the fallback for very large planes)."""
    B, C, H, W = x.shape
    xf = x.astype(jnp.float32)
    count_h = C * (H - 1) * W
    count_w = C * H * (W - 1)
    h_tv = jnp.sum((xf[:, :, 1:, :] - xf[:, :, : H - 1, :]) ** 2)
    w_tv = jnp.sum((xf[:, :, :, 1:] - xf[:, :, :, : W - 1]) ** 2)
    return tv_loss_weight * 2.0 * (h_tv / count_h + w_tv / count_w) / B


def _pick_sizes():
    """(target_block_bytes, vmem_limit_bytes) tuned per TPU generation."""
    try:
        kind = jax.devices()[0].device_kind.lower()
    except Exception:
        kind = ""
    if ("v5" in kind) or ("v6" in kind):
        # 128 MiB physical VMEM: large blocks amortize the ~0.35us step cost.
        return 8 * 1024 * 1024, 48 * 1024 * 1024
    # v7x (64 MiB physical VMEM per TC) or unknown: stay conservative.
    return 4 * 1024 * 1024, 32 * 1024 * 1024


def tv_loss(x, tv_loss_weight: float = 1.0, *,
            target_block_bytes=None, vmem_limit_bytes=None):
    """Total-variation loss matching the PyTorch TVLoss module semantics.

    Note: like the PyTorch module, H == 1 or W == 1 gives count_h / count_w == 0
    and therefore inf/nan (intentionally identical behaviour).
    """
    B, C, H, W = x.shape
    BC, HW = B * C, H * W

    tb_default, vl_default = _pick_sizes()
    if target_block_bytes is None:
        target_block_bytes = tb_default
    if vmem_limit_bytes is None:
        vmem_limit_bytes = vl_default

    itemsize = jnp.dtype(x.dtype).itemsize
    row_mult = max(8, 32 // itemsize)        # sublane tile: 8 f32, 16 bf16, 32 int8

    # Lane-dense layout (B*C, H*W) in the ORIGINAL dtype: contiguous reshape,
    # no HBM copy, no wrapper-side cast.
    xf = x.reshape(BC, HW)

    # ---- Block sizing -------------------------------------------------------
    bytes_per_row = HW * itemsize
    rows_for_target = max(
        row_mult, (target_block_bytes // bytes_per_row) // row_mult * row_mult)
    bc_ceil = pl.cdiv(BC, row_mult) * row_mult
    tbc = min(rows_for_target, bc_ceil)

    # Keep the "parallel" grid axis >= 2 steps when BC allows (v7x megacore).
    if tbc >= BC and bc_ceil >= 2 * row_mult:
        half = pl.cdiv(bc_ceil // 2, row_mult) * row_mult
        tbc = min(tbc, half)

    # Row sub-chunk for the in-kernel accumulation loop (bounds live temps).
    csub = (512 * 1024 // (HW * 4)) // row_mult * row_mult
    csub = max(row_mult, min(64, csub))
    csub = min(csub, tbc)
    tbc = (tbc // csub) * csub               # tbc is a multiple of csub
    n_sub = tbc // csub

    grid_n = pl.cdiv(BC, tbc)
    ragged = (BC % tbc) != 0

    # TODO(synk): tile H*W (multiples of W, one-row halo for the vertical diff)
    # so very large planes stay VMEM-bounded; until then fall back to plain JAX
    # when even the minimum block would blow the VMEM budget.
    min_vmem = 2 * tbc * bytes_per_row + 2 * 8 * HW * 4
    if min_vmem > vmem_limit_bytes // 2:
        return tv_loss_ref(x, tv_loss_weight)

    # Lane-fold the per-step partial down to (8, 128) when HW allows it.
    lane_fold = (HW % 128 == 0) and (HW >= 128)
    lout = 128 if lane_fold else HW

    # Precomputed boundary masks (1, HW): drop last image column / last row.
    col = jnp.arange(HW, dtype=jnp.int32)
    mask_w = ((col % W) != (W - 1)).astype(jnp.float32)[None, :]
    mask_h = (col < (H - 1) * W).astype(jnp.float32)[None, :]

    def kernel(mw_ref, mh_ref, x_ref, h_out, w_out, h_acc, w_acc):
        h_acc[...] = jnp.zeros_like(h_acc)
        w_acc[...] = jnp.zeros_like(w_acc)
        mw = mw_ref[...]                                  # (1, HW), VMEM-resident
        mh = mh_ref[...]

        def accumulate(c):
            start = c * csub
            if not isinstance(start, int):
                start = pl.multiple_of(start, row_mult)
            xs = x_ref[pl.ds(start, csub), :].astype(jnp.float32)   # (csub, HW)
            if ragged:
                # Zero out-of-range tail rows so garbage / NaN can never leak.
                row = (pl.program_id(0) * tbc + c * csub
                       + jax.lax.broadcasted_iota(jnp.int32, (csub, 1), 0))
                xs = jnp.where(row < BC, xs, 0.0)
            # Neighbours via XLU rotation: out[j] = x[(j - shift) mod HW].
            x_right = pltpu.roll(xs, shift=HW - 1, axis=1)          # x[j + 1]
            x_below = pltpu.roll(xs, shift=HW - W, axis=1)          # x[j + W]
            dw = mw * (x_right - xs)
            dh = mh * (x_below - xs)
            # Fold (csub, HW) -> (8, HW) with VPU adds (8-row tile aligned).
            h_acc[...] += (dh * dh).reshape(csub // 8, 8, HW).sum(axis=0)
            w_acc[...] += (dw * dw).reshape(csub // 8, 8, HW).sum(axis=0)

        if n_sub == 1:
            accumulate(0)
        else:
            def body(c, carry):
                accumulate(c)
                return carry
            jax.lax.fori_loop(0, n_sub, body, 0, unroll=True)

        hp = h_acc[...]
        wp = w_acc[...]
        if lane_fold:
            # Lane fold (8, HW) -> (8, 128): 128-aligned slices, VPU adds only.
            h128 = hp[:, 0:128]
            w128 = wp[:, 0:128]
            for k in range(1, HW // 128):
                h128 = h128 + hp[:, k * 128:(k + 1) * 128]
                w128 = w128 + wp[:, k * 128:(k + 1) * 128]
            h_out[0] = h128
            w_out[0] = w128
        else:
            h_out[0] = hp
            w_out[0] = wp

    h_parts, w_parts = pl.pallas_call(
        kernel,
        out_shape=(
            jax.ShapeDtypeStruct((grid_n, 8, lout), jnp.float32),
            jax.ShapeDtypeStruct((grid_n, 8, lout), jnp.float32),
        ),
        grid=(grid_n,),
        in_specs=[
            pl.BlockSpec((1, HW), lambda i: (0, 0)),       # mask_w (constant block)
            pl.BlockSpec((1, HW), lambda i: (0, 0)),       # mask_h (constant block)
            pl.BlockSpec((tbc, HW), lambda i: (i, 0)),     # input planes
        ],
        out_specs=(
            pl.BlockSpec((1, 8, lout), lambda i: (i, 0, 0)),
            pl.BlockSpec((1, 8, lout), lambda i: (i, 0, 0)),
        ),
        scratch_shapes=[
            pltpu.VMEM((8, HW), jnp.float32),
            pltpu.VMEM((8, HW), jnp.float32),
        ],
        compiler_params=pltpu.CompilerParams(
            dimension_semantics=("parallel",),
            vmem_limit_bytes=vmem_limit_bytes,
        ),
    )(mask_w, mask_h, xf)

    # Tiny final reduce + normalization in plain JAX.
    h_tv = jnp.sum(h_parts)
    w_tv = jnp.sum(w_parts)

    # PyTorch-identical normalization (H==1 or W==1 divides by zero, as torch).
    count_h = C * (H - 1) * W
    count_w = C * H * (W - 1)
    return tv_loss_weight * 2.0 * (h_tv / count_h + w_tv / count_w) / B


if __name__ == "__main__":
    key = jax.random.PRNGKey(0)

    # Primary check: f32, shape consistent with the module.
    B, C, H, W = 2, 4, 16, 16
    x = jax.random.normal(key, (B, C, H, W), dtype=jnp.float32)
    out = jax.block_until_ready(tv_loss(x, tv_loss_weight=1.0))
    ref = jax.block_until_ready(tv_loss_ref(x, tv_loss_weight=1.0))
    assert jnp.allclose(out, ref, rtol=1e-5, atol=1e-5), (out, ref)

    # Secondary check: bf16 input (in-kernel cast) + ragged row count (B*C=3).
    x2 = jax.random.normal(jax.random.PRNGKey(1), (1, 3, 16, 16),
                           dtype=jnp.bfloat16)
    out2 = jax.block_until_ready(tv_loss(x2, tv_loss_weight=0.5))
    ref2 = jax.block_until_ready(tv_loss_ref(x2, tv_loss_weight=0.5))
    assert jnp.allclose(out2, ref2, rtol=1e-4, atol=1e-4), (out2, ref2)

    print("KERNEL_OK")
</pallas_src>

<mosaic_0001>
module attributes {stable_mosaic.version = 11 : i64} {
  func.func @kernel(%arg0: i32, %arg1: memref<1x256xf32, #tpu.memory_space<vmem>>, %arg2: memref<1x256xf32, #tpu.memory_space<vmem>>, %arg3: memref<8x256xf32, #tpu.memory_space<vmem>>, %arg4: memref<1x8x128xf32, #tpu.memory_space<vmem>>, %arg5: memref<1x8x128xf32, #tpu.memory_space<vmem>>, %arg6: memref<8x256xf32, #tpu.memory_space<vmem>>, %arg7: memref<8x256xf32, #tpu.memory_space<vmem>>) attributes {dimension_semantics = [#tpu.dimension_semantics<parallel>], iteration_bounds = array<i64: 1>, scalar_prefetch = 0 : i64, scratch_operands = 2 : i64, tpu.core_type = #tpu.core_type<tc>, window_params = [{pipeline_mode = #tpu.pipeline_mode<synchronous>, transform_indices = @transform_0, window_bounds = array<i64: 1, 256>}, {pipeline_mode = #tpu.pipeline_mode<synchronous>, transform_indices = @transform_1, window_bounds = array<i64: 1, 256>}, {transform_indices = @transform_2, window_bounds = array<i64: 8, 256>}, {transform_indices = @transform_3, window_bounds = array<i64: 1, 8, 128>}, {transform_indices = @transform_4, window_bounds = array<i64: 1, 8, 128>}]} {
    %cst = arith.constant 0.000000e+00 : f32
    %0 = vector.broadcast %cst : f32 to vector<8x256xf32>
    %c0 = arith.constant 0 : index
    %c0_0 = arith.constant 0 : index
    %1 = vector.load %arg6[%c0, %c0_0] : memref<8x256xf32, #tpu.memory_space<vmem>>, vector<8x256xf32>
    tpu.vector_store %arg6[%c0, %c0_0], %0 {strides = array<i32>} : memref<8x256xf32, #tpu.memory_space<vmem>>, vector<8x256xf32>,
    %cst_1 = arith.constant 0.000000e+00 : f32
    %2 = vector.broadcast %cst_1 : f32 to vector<8x256xf32>
    %c0_2 = arith.constant 0 : index
    %c0_3 = arith.constant 0 : index
    %3 = vector.load %arg7[%c0_2, %c0_3] : memref<8x256xf32, #tpu.memory_space<vmem>>, vector<8x256xf32>
    tpu.vector_store %arg7[%c0_2, %c0_3], %2 {strides = array<i32>} : memref<8x256xf32, #tpu.memory_space<vmem>>, vector<8x256xf32>,
    %c0_4 = arith.constant 0 : index
    %c0_5 = arith.constant 0 : index
    %4 = vector.load %arg1[%c0_4, %c0_5] : memref<1x256xf32, #tpu.memory_space<vmem>>, vector<1x256xf32>
    %c0_6 = arith.constant 0 : index
    %c0_7 = arith.constant 0 : index
    %5 = vector.load %arg2[%c0_6, %c0_7] : memref<1x256xf32, #tpu.memory_space<vmem>>, vector<1x256xf32>
    %c0_8 = arith.constant 0 : index
    %c0_9 = arith.constant 0 : index
    %6 = vector.load %arg3[%c0_8, %c0_9] : memref<8x256xf32, #tpu.memory_space<vmem>>, vector<8x256xf32>
    %c255_i32 = arith.constant 255 : i32
    %7 = tpu.dynamic_rotate %6 by %c255_i32 dim 1 : vector<8x256xf32>, i32 -> vector<8x256xf32>
    %c240_i32 = arith.constant 240 : i32
    %8 = tpu.dynamic_rotate %6 by %c240_i32 dim 1 : vector<8x256xf32>, i32 -> vector<8x256xf32>
    %9 = arith.subf %7, %6 : vector<8x256xf32>
    %10 = vector.broadcast %4 : vector<1x256xf32> to vector<8x256xf32>
    %11 = arith.mulf %10, %9 : vector<8x256xf32>
    %12 = arith.subf %8, %6 : vector<8x256xf32>
    %13 = vector.broadcast %5 : vector<1x256xf32> to vector<8x256xf32>
    %14 = arith.mulf %13, %12 : vector<8x256xf32>
    %c0_10 = arith.constant 0 : index
    %c0_11 = arith.constant 0 : index
    %15 = vector.load %arg6[%c0_10, %c0_11] : memref<8x256xf32, #tpu.memory_space<vmem>>, vector<8x256xf32>
    %16 = arith.mulf %14, %14 : vector<8x256xf32>
    %17 = vector.shape_cast %16 : vector<8x256xf32> to vector<1x8x256xf32>
    %cst_12 = arith.constant dense<0.000000e+00> : vector<8x256xf32>
    %18 = vector.multi_reduction <add>, %17, %cst_12 [0] : vector<1x8x256xf32> to vector<8x256xf32>
    %19 = arith.addf %15, %18 : vector<8x256xf32>
    %c0_13 = arith.constant 0 : index
    %c0_14 = arith.constant 0 : index
    %20 = vector.load %arg6[%c0_13, %c0_14] : memref<8x256xf32, #tpu.memory_space<vmem>>, vector<8x256xf32>
    tpu.vector_store %arg6[%c0_13, %c0_14], %19 {strides = array<i32>} : memref<8x256xf32, #tpu.memory_space<vmem>>, vector<8x256xf32>,
    %c0_15 = arith.constant 0 : index
    %c0_16 = arith.constant 0 : index
    %21 = vector.load %arg7[%c0_15, %c0_16] : memref<8x256xf32, #tpu.memory_space<vmem>>, vector<8x256xf32>
    %22 = arith.mulf %11, %11 : vector<8x256xf32>
    %23 = vector.shape_cast %22 : vector<8x256xf32> to vector<1x8x256xf32>
    %cst_17 = arith.constant dense<0.000000e+00> : vector<8x256xf32>
    %24 = vector.multi_reduction <add>, %23, %cst_17 [0] : vector<1x8x256xf32> to vector<8x256xf32>
    %25 = arith.addf %21, %24 : vector<8x256xf32>
    %c0_18 = arith.constant 0 : index
    %c0_19 = arith.constant 0 : index
    %26 = vector.load %arg7[%c0_18, %c0_19] : memref<8x256xf32, #tpu.memory_space<vmem>>, vector<8x256xf32>
    tpu.vector_store %arg7[%c0_18, %c0_19], %25 {strides = array<i32>} : memref<8x256xf32, #tpu.memory_space<vmem>>, vector<8x256xf32>,
    %c0_20 = arith.constant 0 : index
    %c0_21 = arith.constant 0 : index
    %27 = vector.load %arg6[%c0_20, %c0_21] : memref<8x256xf32, #tpu.memory_space<vmem>>, vector<8x256xf32>
    %c0_22 = arith.constant 0 : index
    %c0_23 = arith.constant 0 : index
    %28 = vector.load %arg7[%c0_22, %c0_23] : memref<8x256xf32, #tpu.memory_space<vmem>>, vector<8x256xf32>
    %29 = vector.extract_strided_slice %27 {offsets = [0, 0], sizes = [8, 128], strides = [1, 1]} : vector<8x256xf32> to vector<8x128xf32>
    %30 = vector.extract_strided_slice %28 {offsets = [0, 0], sizes = [8, 128], strides = [1, 1]} : vector<8x256xf32> to vector<8x128xf32>
    %31 = vector.extract_strided_slice %27 {offsets = [0, 128], sizes = [8, 128], strides = [1, 1]} : vector<8x256xf32> to vector<8x128xf32>
    %32 = arith.addf %29, %31 : vector<8x128xf32>
    %33 = vector.extract_strided_slice %28 {offsets = [0, 128], sizes = [8, 128], strides = [1, 1]} : vector<8x256xf32> to vector<8x128xf32>
    %34 = arith.addf %30, %33 : vector<8x128xf32>
    %c0_24 = arith.constant 0 : index
    %c0_25 = arith.constant 0 : index
    %c0_26 = arith.constant 0 : index
    %35 = vector.load %arg4[%c0_24, %c0_25, %c0_26] : memref<1x8x128xf32, #tpu.memory_space<vmem>>, vector<1x8x128xf32>
    %36 = vector.shape_cast %35 : vector<1x8x128xf32> to vector<8x128xf32>
    %37 = vector.shape_cast %32 : vector<8x128xf32> to vector<1x8x128xf32>
    tpu.vector_store %arg4[%c0_24, %c0_25, %c0_26], %37 {strides = array<i32>} : memref<1x8x128xf32, #tpu.memory_space<vmem>>, vector<1x8x128xf32>,
    %c0_27 = arith.constant 0 : index
    %c0_28 = arith.constant 0 : index
    %c0_29 = arith.constant 0 : index
    %38 = vector.load %arg5[%c0_27, %c0_28, %c0_29] : memref<1x8x128xf32, #tpu.memory_space<vmem>>, vector<1x8x128xf32>
    %39 = vector.shape_cast %38 : vector<1x8x128xf32> to vector<8x128xf32>
    %40 = vector.shape_cast %34 : vector<8x128xf32> to vector<1x8x128xf32>
    tpu.vector_store %arg5[%c0_27, %c0_28, %c0_29], %40 {strides = array<i32>} : memref<1x8x128xf32, #tpu.memory_space<vmem>>, vector<1x8x128xf32>,
    return
  }
  func.func @transform_0(%arg0: i32) -> (i32, i32) {
    %c0_i32 = arith.constant 0 : i32
    %c0_i32_0 = arith.constant 0 : i32
    %c0_i32_1 = arith.constant 0 : i32
    return %c0_i32, %c0_i32_0 : i32, i32
  }
  func.func @transform_1(%arg0: i32) -> (i32, i32) {
    %c0_i32 = arith.constant 0 : i32
    %c0_i32_0 = arith.constant 0 : i32
    %c0_i32_1 = arith.constant 0 : i32
    return %c0_i32, %c0_i32_0 : i32, i32
  }
  func.func @transform_2(%arg0: i32) -> (i32, i32) {
    %c0_i32 = arith.constant 0 : i32
    %c0_i32_0 = arith.constant 0 : i32
    return %arg0, %c0_i32 : i32, i32
  }
  func.func @transform_3(%arg0: i32) -> (i32, i32, i32) {
    %c0_i32 = arith.constant 0 : i32
    %c0_i32_0 = arith.constant 0 : i32
    %c0_i32_1 = arith.constant 0 : i32
    return %arg0, %c0_i32, %c0_i32_0 : i32, i32, i32
  }
  func.func @transform_4(%arg0: i32) -> (i32, i32, i32) {
    %c0_i32 = arith.constant 0 : i32
    %c0_i32_0 = arith.constant 0 : i32
    %c0_i32_1 = arith.constant 0 : i32
    return %arg0, %c0_i32, %c0_i32_0 : i32, i32, i32
  }
}

</mosaic_0001>

<bundles_post_ra>
// kernel: tpu_custom_call.1
= control target key start
LH: loop header
LB: loop body
LE: loop exit
PB: predicated region body
PF: predicated region fallthrough
CT: control target
= control target key end

     0   :  { %10 = vsyncpa [#allocation5], 0  ;;  %s338_s0 = inlined_call_operand.hbm [shape: f32[1,256], index: 0, kind: input, shape index: {}]   ;;  %s339_s1 = inlined_call_operand.vmem [shape: f32[1,256], index: 1, kind: input, shape index: {}]   ;;  %s340_s2 = inlined_call_operand.hbm [shape: f32[8,256], index: 2, kind: input, shape index: {}]   ;;  %s341_s3 = inlined_call_operand.hbm [shape: f32[1,8,128], index: 3, kind: output, shape index: {0}]   ;;  %s342_s4 = inlined_call_operand.hbm [shape: f32[1,8,128], index: 4, kind: output, shape index: {1}]  }
   0x1   :  { %11 = vsyncpa [#allocation8], 0 }
   0x2   :  { %12 = vsyncpa [#allocation6], 0 }
   0x3   :  { %13 = vsyncpa [#allocation11], 0  ;;  %s256_s15 = smov [#allocation4]   ;;  %s257_s17 = smov [#allocation7]  }
   0x4   :  { %s20_s16 = sshll.u32 %s256_s15, 4  ;;  %s32_s18 = sshll.u32 %s257_s17, 4  ;;  %s21_s16 = int_to_ptr.vmem [resolvable:$true] %s20_s16  ;;  %s33_s18 = int_to_ptr.vmem [resolvable:$true] %s32_s18 }
   0x5   :  { %s160_s21 = scalar_lea.hbm %s338_s0, 32 }
   0x6   :  { %p161_p0 = scmp.ne.s32.totalorder %s338_s0, %s160_s21  ;;  %p164_p1 = scmp.lt.u32.totalorder %s160_s21, %s338_s0 }
   0x8   :  { %p166_p2 = pnand %p164_p1, %p161_p0 }
   0xa   :  { %169 = shalt.err (!%p166_p2)
}
   0xb   :  { %s170_s26 = scalar_lea.vmem %s21_s16, 32  ;;  %p175_p4 = scmp.lt.s32.totalorder %s21_s16, %s21_s16 }
   0xc   :  { %p171_p3 = scmp.ne.s32.totalorder %s21_s16, %s170_s26  ;;  %p176_p5 = scmp.lt.s32.totalorder %s170_s26, %s170_s26 }
   0xe   :  { %p177_p6 = por %p176_p5, %p175_p4 }
  0x10   :  { %p178_p7 = pnand %p177_p6, %p171_p3 }
  0x12   :  { %181 = shalt.err (!%p178_p7)
}
  0x13   :  { %23 = dma.hbm_to_vmem [thread:$0]  %s338_s0, 32, %s21_s16, [#allocation5]  }
  0x14   :  { %s182_s5 = scalar_lea.hbm %s340_s2, 256 }
  0x15   :  { %p183_p8 = scmp.ne.s32.totalorder %s340_s2, %s182_s5  ;;  %p186_p9 = scmp.lt.u32.totalorder %s182_s5, %s340_s2 }
  0x17   :  { %p188_p10 = pnand %p186_p9, %p183_p8 }
  0x19   :  { %191 = shalt.err (!%p188_p10)
}
  0x1a   :  { %s192_s10 = scalar_lea.vmem %s33_s18, 256  ;;  %p197_p12 = scmp.lt.s32.totalorder %s33_s18, %s33_s18 }
  0x1b   :  { %p193_p11 = scmp.ne.s32.totalorder %s33_s18, %s192_s10  ;;  %p198_p13 = scmp.lt.s32.totalorder %s192_s10, %s192_s10 }
  0x1d   :  { %p199_p0 = por %p198_p13, %p197_p12 }
  0x1f   :  { %p200_p1 = pnand %p199_p0, %p193_p11 }
  0x21   :  { %203 = shalt.err (!%p200_p1)
}
  0x22   :  { %35 = dma.hbm_to_vmem [thread:$0]  %s340_s2, 256, %s33_s18, [#allocation8]  }
  0x23   :  { %248 = dma.done.wait [#allocation5], 32  }
  0x24   :  { %249 = vsyncadd [#allocation5], 4294967264 }
  0x25   :  { %250 = dma.done.wait [#allocation8], 256  }
  0x26   :  { %251 = vsyncadd [#allocation8], 4294967040  ;;  %v48_v0 = vld [vmem:[#allocation7] sm:$0xff]  ;;  %s258_s12 = smov 112   ;;  %s259_s13 = smov 127   ;;  %v49_v1 = vld [vmem:[#allocation7 + $0x8] sm:$0xff]  ;;  %v54_v2 = vlaneseq }
  0x27   :  { %59 = vrot.lane.b32.xlu1 %v48_v0, %s258_s12  ;;  %50 = vrot.lane.b32.xlu0 %v48_v0, %s259_s13  ;;  %v47_v9 = vld [vmem:[%s339_s1] sm:$0x3]  ;;  %s260_s1 = smov [#allocation9]   ;;  %s261_s16 = smov [#allocation10]  }
  0x28   :  { %v70_v3 = vshrl.u32 %v54_v2, 7  ;;  %v55_v4 = vand.u32 127, %v54_v2  ;;  %v46_v10 = vld [vmem:[#allocation4] sm:$0x3]  ;;  %s130_s15 = sshll.u32 %s260_s1, 4  ;;  %s140_s17 = sshll.u32 %s261_s16, 4  ;;  %s131_s15 = int_to_ptr.vmem [resolvable:$true] %s130_s15  ;;  %s141_s17 = int_to_ptr.vmem [resolvable:$true] %s140_s17 }
  0x29   :  { %s204_s18 = scalar_lea.vmem %s131_s15, 128  ;;  %p209_p3 = scmp.lt.s32.totalorder %s131_s15, %s131_s15 }
  0x2a   :  { %v71_v7 = vsub.s32 0, %v70_v3  ;;  %v75_v8 = vsub.s32 1, %v70_v3  ;;  %vm63_vm0 = vcmp.lt.s32.totalorder %v55_v4, 112  ;;  %vm56_vm1 = vcmp.lt.s32.totalorder %v55_v4, 127  ;;  %p205_p2 = scmp.ne.s32.totalorder %s131_s15, %s204_s18  ;;  %p210_p4 = scmp.lt.s32.totalorder %s204_s18, %s204_s18 }
  0x2b   :  { %61 = vrot.lane.b32.xlu1 %v49_v1, %s258_s12  ;;  %52 = vrot.lane.b32.xlu0 %v49_v1, %s259_s13 }
  0x2c   :  { %v87_v12 = vrot.slane %v47_v9, %v71_v7  ;;  %v91_v13 = vrot.slane %v47_v9, %v75_v8  ;;  %v72_v15 = vrot.slane %v46_v10, %v71_v7  ;;  %v76_v16 = vrot.slane %v46_v10, %v75_v8  ;;  %p211_p5 = por %p210_p4, %p209_p3 }
  0x2e   :  { %p212_p6 = pnand %p211_p5, %p205_p2 }
  0x99   :  { %v60_v5 = vpop.permute.xlu1 %59  ;;  %v51_v6 = vpop.permute.xlu0 %50 }
  0x9d   :  { %v62_v11 = vpop.permute.xlu1 %61  ;;  %v53_v14 = vpop.permute.xlu0 %52 }
  0x9e   :  { %v64_v17 = vsel %vm63_vm0, %v60_v5, %v62_v11  ;;  %v65_v18 = vsel %vm63_vm0, %v62_v11, %v60_v5  ;;  %v57_v19 = vsel %vm56_vm1, %v51_v6, %v53_v14  ;;  %v58_v20 = vsel %vm56_vm1, %v53_v14, %v51_v6 }
  0x9f   :  { %v81_v21 = vsub.f32 %v64_v17, %v48_v0  ;;  %v82_v22 = vsub.f32 %v65_v18, %v49_v1  ;;  %v66_v23 = vsub.f32 %v57_v19, %v48_v0  ;;  %v67_v24 = vsub.f32 %v58_v20, %v49_v1 }
  0xa1   :  { %v94_v25 = vmul.f32 %v87_v12, %v81_v21  ;;  %v95_v26 = vmul.f32 %v91_v13, %v82_v22  ;;  %v79_v27 = vmul.f32 %v72_v15, %v66_v23  ;;  %v80_v28 = vmul.f32 %v76_v16, %v67_v24 }
  0xa3   :  { %v98_v29 = vmul.f32 %v94_v25, %v94_v25  ;;  %v99_v30 = vmul.f32 %v95_v26, %v95_v26  ;;  %v108_v31 = vmul.f32 %v79_v27, %v79_v27  ;;  %v109_v32 = vmul.f32 %v80_v28, %v80_v28 }
  0xa5   :  { %v120_v33 = vadd.f32 %v99_v30, %v98_v29  ;;  %v121_v34 = vadd.f32 %v109_v32, %v108_v31 }
  0xa7   :  { %122 = vst [vmem:[#allocation9] sm:$0xff] %v120_v33  ;;  %123 = vst [vmem:[#allocation10] sm:$0xff] %v121_v34 }
  0xa8   :  { %215 = shalt.err (!%p212_p6)
}
  0xa9   :  { %s216_s21 = scalar_lea.hbm %s341_s3, 128 }
  0xaa   :  { %p217_p7 = scmp.ne.s32.totalorder %s341_s3, %s216_s21  ;;  %p220_p8 = scmp.lt.u32.totalorder %s216_s21, %s341_s3 }
  0xac   :  { %p222_p9 = pnand %p220_p8, %p217_p7 }
  0xae   :  { %225 = shalt.err (!%p222_p9)
}
  0xaf   :  { %133 = dma.vmem_to_hbm [thread:$0]  %s131_s15, 128, %s341_s3, [#allocation6]  }
  0xb0   :  { %s226_s28 = scalar_lea.vmem %s141_s17, 128  ;;  %p231_p11 = scmp.lt.s32.totalorder %s141_s17, %s141_s17 }
  0xb1   :  { %p227_p10 = scmp.ne.s32.totalorder %s141_s17, %s226_s28  ;;  %p232_p12 = scmp.lt.s32.totalorder %s226_s28, %s226_s28 }
  0xb3   :  { %p233_p13 = por %p232_p12, %p231_p11 }
  0xb5   :  { %p234_p0 = pnand %p233_p13, %p227_p10 }
  0xb7   :  { %237 = shalt.err (!%p234_p0)
}
  0xb8   :  { %s238_s5 = scalar_lea.hbm %s342_s4, 128 }
  0xb9   :  { %p239_p1 = scmp.ne.s32.totalorder %s342_s4, %s238_s5  ;;  %p242_p2 = scmp.lt.u32.totalorder %s238_s5, %s342_s4 }
  0xbb   :  { %p244_p3 = pnand %p242_p2, %p239_p1 }
  0xbd   :  { %247 = shalt.err (!%p244_p3)
}
  0xbe   :  { %143 = dma.vmem_to_hbm [thread:$0]  %s141_s17, 128, %s342_s4, [#allocation11]  }
  0xbf   :  { %252 = dma.done.wait [#allocation6], 128  }
  0xc0   :  { %253 = vsyncadd [#allocation6], 4294967168 }
  0xc1   :  { %254 = dma.done.wait [#allocation11], 128  }
  0xc2   :  { %255 = vsyncadd [#allocation11], 4294967168 }
  0xc3   :  { %150 = vsyncpa [#allocation5], 1 }
  0xc4   :  { %151 = vsyncpa [#allocation8], 1 }
  0xc5   :  { %152 = vsyncpa [#allocation6], 1 }
  0xc6   :  { %153 = vsyncpa [#allocation11], 1 }

</bundles_post_ra>
